<compile_context>
chip_gen: v6e
topology: v6e:2x2x1
jax: 0.10.0
libtpu: 0.0.40
codegen_flags: <defaults>
</compile_context>

<pallas_src>
import functools

import jax
import jax.numpy as jnp
import numpy as np
from jax.experimental import pallas as pl
from jax.experimental.pallas import tpu as pltpu


# ----------------------------- Pallas kernel --------------------------------
def _conv_block_kernel(x_ref, w_ref, b_ref, gamma_ref, beta_ref, keep_ref,
                       out_ref, *, kernel_size, dilation, t_out, c_out, c_pad,
                       eps):
    K, D = kernel_size, dilation

    # im2col: K statically-shifted (T_out, C_in) views of the time-padded input,
    # cast to bf16, concatenated on the lane dim -> ONE MXU matmul with
    # contraction K*C_in.
    taps = [x_ref[j * D:j * D + t_out, :].astype(jnp.bfloat16) for j in range(K)]
    im2col = taps[0] if K == 1 else jnp.concatenate(taps, axis=-1)

    # bf16 MXU feed (w_ref already bf16 from the wrapper), f32 accumulation.
    y = jnp.dot(im2col, w_ref[...],
                preferred_element_type=jnp.float32)          # (T_out, C_pad)
    y = y + b_ref[...]                                       # conv bias (f32)
    y = jnp.maximum(y, 0.0)                                  # ReLU

    # LayerNorm over the real C_out channels.  Padded lanes are exactly 0 here
    # (zero weight columns + zero bias), so the raw row-sum / C_out is the mean.
    inv_n = jnp.float32(1.0 / c_out)
    mean = jnp.sum(y, axis=-1, keepdims=True) * inv_n
    centered = y - mean
    sq = centered * centered
    if c_pad != c_out:
        # exclude padded lanes from the variance
        lane = jax.lax.broadcasted_iota(jnp.int32, (t_out, c_pad), 1)
        sq = jnp.where(lane < c_out, sq, 0.0)
    var = jnp.sum(sq, axis=-1, keepdims=True) * inv_n
    inv_std = jax.lax.rsqrt(var + eps)
    # gamma/beta are zero-padded -> padded lanes come out exactly 0.
    y = centered * inv_std * gamma_ref[...] + beta_ref[...]

    # masked_fill(mask, 0) == multiply by the keep mask (T_out, 1).
    out_ref[...] = (y * keep_ref[...]).astype(out_ref.dtype)


# ------------------------------- Wrapper -------------------------------------
def conv_block_pallas(enc_input, mask, weight, bias, gamma, beta, *,
                      kernel_size, stride=1, padding=0, dilation=1, eps=1e-5):
    """ConvBlock forward.

    enc_input: (B, T, C_in) channel-last.
    mask:      (B, T_out) bool, True = position to zero, or None.
    weight:    (C_out, C_in, K) Conv1d weight; bias: (C_out,).
    gamma, beta: (C_out,) LayerNorm affine parameters.
    """
    # TODO(synk): stride > 1 not implemented (module default is stride=1).
    assert stride == 1, "only stride=1 is supported"
    B, T, C_in = enc_input.shape
    C_out, C_in_w, K = weight.shape
    assert C_in_w == C_in and K == kernel_size
    T_out = T + 2 * padding - dilation * (K - 1)
    assert T_out >= 1

    # Lane-dense output channels and sublane-aligned time.
    C_pad = 128 * pl.cdiv(C_out, 128)
    T_out_p = 8 * pl.cdiv(T_out, 8)
    T_in_p = T_out_p + dilation * (K - 1)          # rows the kernel reads

    # Time-pad the input with zeros (conv borders + sublane alignment tail).
    x_pad = jnp.pad(enc_input.astype(jnp.float32),
                    ((0, 0), (padding, T_in_p - T - padding), (0, 0)))

    # (C_out, C_in, K) -> (K*C_in, C_pad) im2col weight, bf16 (half the DMA).
    w_im2col = jnp.transpose(weight, (2, 1, 0)).reshape(K * C_in, C_out)
    w_im2col = jnp.pad(w_im2col, ((0, 0), (0, C_pad - C_out))).astype(jnp.bfloat16)
    b_p = jnp.pad(bias, (0, C_pad - C_out)).reshape(1, C_pad).astype(jnp.float32)
    g_p = jnp.pad(gamma, (0, C_pad - C_out)).reshape(1, C_pad).astype(jnp.float32)
    be_p = jnp.pad(beta, (0, C_pad - C_out)).reshape(1, C_pad).astype(jnp.float32)

    if mask is None:
        keep = jnp.ones((B, T_out), jnp.float32)
    else:
        keep = 1.0 - mask.astype(jnp.float32)
    keep = jnp.pad(keep, ((0, 0), (0, T_out_p - T_out))).reshape(B, T_out_p, 1)

    kernel = functools.partial(
        _conv_block_kernel, kernel_size=K, dilation=dilation, t_out=T_out_p,
        c_out=C_out, c_pad=C_pad, eps=float(eps))

    out = pl.pallas_call(
        kernel,
        out_shape=jax.ShapeDtypeStruct((B, T_out_p, C_pad), jnp.float32),
        grid_spec=pltpu.PrefetchScalarGridSpec(
            num_scalar_prefetch=0,
            grid=(B,),
            in_specs=[
                pl.BlockSpec((None, T_in_p, C_in), lambda i: (i, 0, 0)),   # x (padded)
                pl.BlockSpec((K * C_in, C_pad), lambda i: (0, 0)),         # im2col weight
                pl.BlockSpec((1, C_pad), lambda i: (0, 0)),                # conv bias
                pl.BlockSpec((1, C_pad), lambda i: (0, 0)),                # LN gamma
                pl.BlockSpec((1, C_pad), lambda i: (0, 0)),                # LN beta
                pl.BlockSpec((None, T_out_p, 1), lambda i: (i, 0, 0)),     # keep mask
            ],
            out_specs=pl.BlockSpec((None, T_out_p, C_pad), lambda i: (i, 0, 0)),
        ),
        compiler_params=pltpu.CompilerParams(
            dimension_semantics=("parallel",),            # batch shards across cores
            vmem_limit_bytes=32 * 1024 * 1024),
    )(x_pad, w_im2col, b_p, g_p, be_p, keep)

    return out[:, :T_out, :C_out]                          # drop lane/sublane padding


# ------------------------- Pure-JAX reference --------------------------------
def conv_block_ref(enc_input, mask, weight, bias, gamma, beta, *,
                   kernel_size, stride=1, padding=0, dilation=1, eps=1e-5):
    hi = jax.lax.Precision.HIGHEST
    x = jnp.transpose(enc_input, (0, 2, 1))               # (B, C_in, T)
    y = jax.lax.conv_general_dilated(
        x, weight, window_strides=(stride,), padding=[(padding, padding)],
        rhs_dilation=(dilation,), dimension_numbers=('NCH', 'OIH', 'NCH'),
        precision=hi) + bias[None, :, None]
    y = jnp.transpose(y, (0, 2, 1))                       # (B, T_out, C_out)
    y = jnp.maximum(y, 0.0)                               # ReLU
    mean = jnp.mean(y, axis=-1, keepdims=True)
    var = jnp.mean((y - mean) ** 2, axis=-1, keepdims=True)
    y = (y - mean) * jax.lax.rsqrt(var + eps) * gamma + beta
    if mask is not None:
        y = jnp.where(mask[:, :, None], 0.0, y)
    return y


# ---------------------------------- Main -------------------------------------
if __name__ == "__main__":
    B, T, C_in, C_out, K = 2, 16, 32, 32, 3
    PAD, DIL = 1, 1                                        # "same"-style conv

    key = jax.random.PRNGKey(0)
    k1, k2, k3, k4, k5 = jax.random.split(key, 5)
    weight = jax.random.normal(k1, (C_out, C_in, K), jnp.float32) / np.sqrt(C_in * K)
    bias = 0.1 * jax.random.normal(k2, (C_out,), jnp.float32)
    gamma = 1.0 + 0.1 * jax.random.normal(k3, (C_out,), jnp.float32)
    beta = 0.1 * jax.random.normal(k4, (C_out,), jnp.float32)
    x = jax.random.normal(k5, (B, T, C_in), jnp.float32)   # channel-last input

    lengths = jnp.array([T, 12])
    mask = jnp.arange(T)[None, :] >= lengths[:, None]      # True = padding position

    cfg = dict(kernel_size=K, stride=1, padding=PAD, dilation=DIL)
    y_kernel = conv_block_pallas(x, mask, weight, bias, gamma, beta, **cfg)
    y_kernel = jax.block_until_ready(y_kernel)

    y_ref = conv_block_ref(x, mask, weight, bias, gamma, beta, **cfg)
    # bf16 MXU feed -> tolerance loosened vs the f32 HIGHEST-precision reference.
    np.testing.assert_allclose(np.asarray(y_kernel), np.asarray(y_ref),
                               rtol=2e-2, atol=2e-2)
    print("KERNEL_OK")
</pallas_src>

<mosaic_0001>
module attributes {stable_mosaic.version = 11 : i64} {
  func.func @_conv_block_kernel(%arg0: i32, %arg1: memref<1x18x32xf32, #tpu.memory_space<vmem>>, %arg2: memref<96x128xbf16, #tpu.memory_space<vmem>>, %arg3: memref<1x128xf32, #tpu.memory_space<vmem>>, %arg4: memref<1x128xf32, #tpu.memory_space<vmem>>, %arg5: memref<1x128xf32, #tpu.memory_space<vmem>>, %arg6: memref<1x16x1xf32, #tpu.memory_space<vmem>>, %arg7: memref<1x16x128xf32, #tpu.memory_space<vmem>>) attributes {dimension_semantics = [#tpu.dimension_semantics<parallel>], iteration_bounds = array<i64: 2>, scalar_prefetch = 0 : i64, scratch_operands = 0 : i64, tpu.core_type = #tpu.core_type<tc>, window_params = [{transform_indices = @transform_0, window_bounds = array<i64: 1, 18, 32>}, {pipeline_mode = #tpu.pipeline_mode<synchronous>, transform_indices = @transform_1, window_bounds = array<i64: 96, 128>}, {pipeline_mode = #tpu.pipeline_mode<synchronous>, transform_indices = @transform_2, window_bounds = array<i64: 1, 128>}, {pipeline_mode = #tpu.pipeline_mode<synchronous>, transform_indices = @transform_3, window_bounds = array<i64: 1, 128>}, {pipeline_mode = #tpu.pipeline_mode<synchronous>, transform_indices = @transform_4, window_bounds = array<i64: 1, 128>}, {transform_indices = @transform_5, window_bounds = array<i64: 1, 16, 1>}, {transform_indices = @transform_6, window_bounds = array<i64: 1, 16, 128>}]} {
    %c0 = arith.constant 0 : index
    %c0_0 = arith.constant 0 : index
    %c0_1 = arith.constant 0 : index
    %0 = vector.load %arg1[%c0, %c0_0, %c0_1] : memref<1x18x32xf32, #tpu.memory_space<vmem>>, vector<1x16x32xf32>
    %1 = vector.shape_cast %0 : vector<1x16x32xf32> to vector<16x32xf32>
    %2 = arith.truncf %1 : vector<16x32xf32> to vector<16x32xbf16>
    %c0_2 = arith.constant 0 : index
    %c1 = arith.constant 1 : index
    %c0_3 = arith.constant 0 : index
    %3 = vector.load %arg1[%c0_2, %c1, %c0_3] : memref<1x18x32xf32, #tpu.memory_space<vmem>>, vector<1x16x32xf32>
    %4 = vector.shape_cast %3 : vector<1x16x32xf32> to vector<16x32xf32>
    %5 = arith.truncf %4 : vector<16x32xf32> to vector<16x32xbf16>
    %c0_4 = arith.constant 0 : index
    %c2 = arith.constant 2 : index
    %c0_5 = arith.constant 0 : index
    %6 = vector.load %arg1[%c0_4, %c2, %c0_5] : memref<1x18x32xf32, #tpu.memory_space<vmem>>, vector<1x16x32xf32>
    %7 = vector.shape_cast %6 : vector<1x16x32xf32> to vector<16x32xf32>
    %8 = arith.truncf %7 : vector<16x32xf32> to vector<16x32xbf16>
    %9 = tpu.concatenate %2, %5, %8 in 1 : vector<16x32xbf16>, vector<16x32xbf16>, vector<16x32xbf16> -> vector<16x96xbf16>
    %c0_6 = arith.constant 0 : index
    %c0_7 = arith.constant 0 : index
    %10 = vector.load %arg2[%c0_6, %c0_7] : memref<96x128xbf16, #tpu.memory_space<vmem>>, vector<96x128xbf16>
    %cst = arith.constant dense<0.000000e+00> : vector<16x128xf32>
    %11 = tpu.matmul %9, %10, %cst {dimension_numbers = #tpu.dot_dimension_numbers<[1], [0], [0], [1], [0, 0, 1, 1], [], []>} : vector<16x96xbf16>, vector<96x128xbf16>, vector<16x128xf32> -> vector<16x128xf32>
    %c0_8 = arith.constant 0 : index
    %c0_9 = arith.constant 0 : index
    %12 = vector.load %arg3[%c0_8, %c0_9] : memref<1x128xf32, #tpu.memory_space<vmem>>, vector<1x128xf32>
    %13 = vector.broadcast %12 : vector<1x128xf32> to vector<16x128xf32>
    %14 = arith.addf %11, %13 : vector<16x128xf32>
    %cst_10 = arith.constant 0.000000e+00 : f32
    %15 = vector.broadcast %cst_10 : f32 to vector<16x128xf32>
    %16 = arith.maximumf %14, %15 : vector<16x128xf32>
    %cst_11 = arith.constant dense<0.000000e+00> : vector<16xf32>
    %17 = vector.multi_reduction <add>, %16, %cst_11 [1] : vector<16x128xf32> to vector<16xf32>
    %18 = vector.shape_cast %17 : vector<16xf32> to vector<16x1xf32>
    %cst_12 = arith.constant 3.125000e-02 : f32
    %19 = vector.broadcast %cst_12 : f32 to vector<16x1xf32>
    %20 = arith.mulf %18, %19 : vector<16x1xf32>
    %21 = vector.broadcast %20 : vector<16x1xf32> to vector<16x128xf32>
    %22 = arith.subf %16, %21 : vector<16x128xf32>
    %23 = arith.mulf %22, %22 : vector<16x128xf32>
    %24 = tpu.iota {dimensions = array<i32: 1>} : vector<16x128xi32>
    %c32_i32 = arith.constant 32 : i32
    %25 = vector.broadcast %c32_i32 : i32 to vector<16x128xi32>
    %26 = arith.cmpi slt, %24, %25 : vector<16x128xi32>
    %cst_13 = arith.constant 0.000000e+00 : f32
    %27 = vector.broadcast %cst_13 : f32 to vector<16x128xf32>
    %28 = arith.select %26, %23, %27 : vector<16x128xi1>, vector<16x128xf32>
    %cst_14 = arith.constant dense<0.000000e+00> : vector<16xf32>
    %29 = vector.multi_reduction <add>, %28, %cst_14 [1] : vector<16x128xf32> to vector<16xf32>
    %30 = vector.shape_cast %29 : vector<16xf32> to vector<16x1xf32>
    %cst_15 = arith.constant 3.125000e-02 : f32
    %31 = vector.broadcast %cst_15 : f32 to vector<16x1xf32>
    %32 = arith.mulf %30, %31 : vector<16x1xf32>
    %cst_16 = arith.constant 9.99999974E-6 : f32
    %33 = vector.broadcast %cst_16 : f32 to vector<16x1xf32>
    %34 = arith.addf %32, %33 : vector<16x1xf32>
    %35 = math.rsqrt %34 : vector<16x1xf32>
    %36 = vector.broadcast %35 : vector<16x1xf32> to vector<16x128xf32>
    %37 = arith.mulf %22, %36 : vector<16x128xf32>
    %c0_17 = arith.constant 0 : index
    %c0_18 = arith.constant 0 : index
    %38 = vector.load %arg4[%c0_17, %c0_18] : memref<1x128xf32, #tpu.memory_space<vmem>>, vector<1x128xf32>
    %39 = vector.broadcast %38 : vector<1x128xf32> to vector<16x128xf32>
    %40 = arith.mulf %37, %39 : vector<16x128xf32>
    %c0_19 = arith.constant 0 : index
    %c0_20 = arith.constant 0 : index
    %41 = vector.load %arg5[%c0_19, %c0_20] : memref<1x128xf32, #tpu.memory_space<vmem>>, vector<1x128xf32>
    %42 = vector.broadcast %41 : vector<1x128xf32> to vector<16x128xf32>
    %43 = arith.addf %40, %42 : vector<16x128xf32>
    %c0_21 = arith.constant 0 : index
    %c0_22 = arith.constant 0 : index
    %c0_23 = arith.constant 0 : index
    %44 = vector.load %arg6[%c0_21, %c0_22, %c0_23] : memref<1x16x1xf32, #tpu.memory_space<vmem>>, vector<1x16x1xf32>
    %45 = vector.shape_cast %44 : vector<1x16x1xf32> to vector<16x1xf32>
    %46 = vector.broadcast %45 : vector<16x1xf32> to vector<16x128xf32>
    %47 = arith.mulf %43, %46 : vector<16x128xf32>
    %c0_24 = arith.constant 0 : index
    %c0_25 = arith.constant 0 : index
    %c0_26 = arith.constant 0 : index
    %48 = vector.load %arg7[%c0_24, %c0_25, %c0_26] : memref<1x16x128xf32, #tpu.memory_space<vmem>>, vector<1x16x128xf32>
    %49 = vector.shape_cast %48 : vector<1x16x128xf32> to vector<16x128xf32>
    %50 = vector.shape_cast %47 : vector<16x128xf32> to vector<1x16x128xf32>
    tpu.vector_store %arg7[%c0_24, %c0_25, %c0_26], %50 {strides = array<i32>} : memref<1x16x128xf32, #tpu.memory_space<vmem>>, vector<1x16x128xf32>,
    return
  }
  func.func @transform_0(%arg0: i32) -> (i32, i32, i32) {
    %c0_i32 = arith.constant 0 : i32
    %c0_i32_0 = arith.constant 0 : i32
    %c0_i32_1 = arith.constant 0 : i32
    return %arg0, %c0_i32, %c0_i32_0 : i32, i32, i32
  }
  func.func @transform_1(%arg0: i32) -> (i32, i32) {
    %c0_i32 = arith.constant 0 : i32
    %c0_i32_0 = arith.constant 0 : i32
    %c0_i32_1 = arith.constant 0 : i32
    return %c0_i32, %c0_i32_0 : i32, i32
  }
  func.func @transform_2(%arg0: i32) -> (i32, i32) {
    %c0_i32 = arith.constant 0 : i32
    %c0_i32_0 = arith.constant 0 : i32
    %c0_i32_1 = arith.constant 0 : i32
    return %c0_i32, %c0_i32_0 : i32, i32
  }
  func.func @transform_3(%arg0: i32) -> (i32, i32) {
    %c0_i32 = arith.constant 0 : i32
    %c0_i32_0 = arith.constant 0 : i32
    %c0_i32_1 = arith.constant 0 : i32
    return %c0_i32, %c0_i32_0 : i32, i32
  }
  func.func @transform_4(%arg0: i32) -> (i32, i32) {
    %c0_i32 = arith.constant 0 : i32
    %c0_i32_0 = arith.constant 0 : i32
    %c0_i32_1 = arith.constant 0 : i32
    return %c0_i32, %c0_i32_0 : i32, i32
  }
  func.func @transform_5(%arg0: i32) -> (i32, i32, i32) {
    %c0_i32 = arith.constant 0 : i32
    %c0_i32_0 = arith.constant 0 : i32
    %c0_i32_1 = arith.constant 0 : i32
    return %arg0, %c0_i32, %c0_i32_0 : i32, i32, i32
  }
  func.func @transform_6(%arg0: i32) -> (i32, i32, i32) {
    %c0_i32 = arith.constant 0 : i32
    %c0_i32_0 = arith.constant 0 : i32
    %c0_i32_1 = arith.constant 0 : i32
    return %arg0, %c0_i32, %c0_i32_0 : i32, i32, i32
  }
}

</mosaic_0001>

<bundles_post_ra>
// kernel: tpu_custom_call.1
= control target key start
LH: loop header
LB: loop body
LE: loop exit
PB: predicated region body
PF: predicated region fallthrough
CT: control target
= control target key end

     0   :  { %11 = vsyncpa [#allocation3], 0  ;;  %s891_s0 = inlined_call_operand.vmem [shape: f32[2,18,32], index: 0, kind: input, shape index: {}]   ;;  %s892_s1 = inlined_call_operand.vmem [shape: bf16[96,128], index: 1, kind: input, shape index: {}]   ;;  %s893_s2 = inlined_call_operand.vmem [shape: f32[1,128], index: 2, kind: input, shape index: {}]   ;;  %s894_s3 = inlined_call_operand.vmem [shape: f32[1,128], index: 3, kind: input, shape index: {}]   ;;  %s895_s4 = inlined_call_operand.vmem [shape: f32[1,128], index: 4, kind: input, shape index: {}]   ;;  %s896_s5 = inlined_call_operand.vmem [shape: f32[2,16,1], index: 5, kind: input, shape index: {}]   ;;  %s897_s6 = inlined_call_operand.hbm [shape: f32[2,16,128], index: 6, kind: output, shape index: {}]  }
   0x1   :  { %13 = vsyncpa [#allocation3 + $0x1], 0  ;;  %s755_s21 = smov 0   ;;  %s757_s22 = smov 0  }
   0x2   :  { %s759_s23 = smov 0   ;;  %s761_s24 = smov 0  }
   0x3 LB: > { %s776_s25 = sadd.s32 4294967295, %s710_s24   ;;  %s543_s26 = sadd.s32 4294967294, %s710_s24   ;;  %s710_s24 = sphi %s761_s24, %s903_s24   ;;  %s706_s23 = sphi %s759_s23, %s902_s23   ;;  %s702_s22 = sphi %s757_s22, %s901_s22   ;;  %s698_s21 = sphi %s755_s21, %s900_s21  }
   0x4   : > { %s780_s27 = sadd.s32 1, %s710_s24   ;;  %s162_s28 = sadd.s32 1, %s706_s23 }
   0x5   : > { %s159_s29 = ssub.s32 %s710_s24, %s780_s27  ;;  %p172_p0 = scmp.ne.s32.totalorder %s706_s23, %s702_s22 }
   0x6   : > { %p160_p1 = scmp.eq.s32.totalorder %s159_s29, 0  ;;  %p173_p2 = scmp.eq.s32.totalorder %s776_s25, 1 }
   0x7   : > { %p178_p3 = scmp.ne.s32.totalorder %s702_s22, %s698_s21  ;;  %p179_p4 = scmp.eq.s32.totalorder %s543_s26, 1 }
   0x8   : > { %s791_s30 = scalar_select %p160_p1, %s706_s23, %s162_s28  }
   0x9   : > { %p793_p5 = por %p173_p2, %p172_p0  ;;  %p797_p6 = por %p179_p4, %p178_p3 }
   0xa   : > { %p546_p7 = scmp.ge.s32.totalorder %s710_s24, 1  ;;  %p225_p8 = scmp.lt.s32.totalorder %s710_s24, 3 }
   0xc   : > { %p226_p9 = pnand %p546_p7, %p225_p8 }
   0xd   : > { %p260_p10 = scmp.lt.s32.totalorder (!%p226_p9), %s776_s25, 1  ;;  %s714_s20 = smov (!%p226_p9), 32  }
   0xe   : > { %229 = sbr.rel (%p226_p9) target bundleno = 671 (0x29f), region = 44  ;;  %s715_s29 = smov (!%p226_p9), 64  }
   0xf   : > { %s257_s26 = sand.u32 (!%p226_p9), 1, %s702_s22   ;;  %s567_s13 = sshll.u32 (!%p226_p9), %s776_s25, 8 }
  0x10   : > { %s547_s9 = sshll.u32 (!%p226_p9), %s257_s26, 4 }
  0x11   : > { %s259_s10 = scalar_lea.vmem (!%p226_p9), [#allocation2], %s547_s9 }
  0x12   : > { %s469_s12 = sshll.u32 (!%p226_p9), %s259_s10, 4  ;;  %s844_s12 = int_to_ptr.vmem [resolvable:$true] %s469_s12 }
  0x13   : > { %v640_v0 = vld [vmem:[%s892_s1 + $0x28] sm:$0xff]   ;;  %v712_v1 = vmov 0.0   ;;  %s808_s11 = scalar_select %p260_p10, %s776_s25, 1  ;;  %v641_v2 = vld [vmem:[%s892_s1 + $0x20] sm:$0xff]   ;;  %v642_v3 = vld [vmem:[%s892_s1 + $0x18] sm:$0xff]   ;;  %vm713_vm0 = vmmov 0   ;;  %v404_v31 = vlaneseq }
  0x14   : > { %575 = vmatprep.subr.bf16.mxu0 %v712_v1  ;;  %587 = vmatprep.mubr.msk.bf16.mxu0 %vm713_vm0, %v712_v1  ;;  %v643_v10 = vld [vmem:[%s892_s1 + $0x10] sm:$0xff]   ;;  %v644_v11 = vld [vmem:[%s892_s1 + $0x8] sm:$0xff]   ;;  %v645_v12 = vld [vmem:[%s892_s1] sm:$0xff]   ;;  %vm286_vm1 = vcmask 261120   ;;  %vm290_vm2 = vcmask 523264   ;;  %vm348_vm3 = vcmask 785408  }
  0x15   : > { %576 = vmatpush3.bf16.msra.mxu0 %v640_v0  ;;  %s591_s14 = smul.u32 24, %s808_s11  ;;  %v716_v20 = vmov 0   ;;  %v551_v21 = vld [vmem:[%s893_s2] ss:$0 sm:$0xff]  ;;  %s566_s16 = sshll.u32 %s808_s11, 4  ;;  %v405_v33 = vand.u32 127, %v404_v31 }
  0x16   : > { %577 = vmatprep.subr.bf16.mxu0 %v712_v1  ;;  %638 = vset.pattern.permute.xlu1 %v716_v20  ;;  %s269_s19 = scalar_lea.vmem %s896_s5, %s566_s16  ;;  %v559_v52 = vld [vmem:[%s894_s3] ss:$0 sm:$0xff]  ;;  %s849_s16 = scalar_lea.hbm %s897_s6, %s567_s13 }
  0x17   : > { %s264_s17 = scalar_lea.vmem %s891_s0, %s591_s14  ;;  %639 = vset.pattern.permute.xlu0 %v716_v20  ;;  %v439_v30 = vld [vmem:[%s269_s19] sm:$0xff]  ;;  %vm406_vm4 = vcmp.lt.s32.totalorder %v405_v33, 32  ;;  %v440_v43 = vld [vmem:[%s269_s19 + $0x8] sm:$0xff]  ;;  %s650_s18 = scalar_lea.vmem %s844_s12, 256 }
  0x18   : > { %v274_v4 = vld [vmem:[%s264_s17 + $0x1] sm:$0xff]  ;;  %v275_v5 = vld [vmem:[%s264_s17 + $0x9] sm:$0xff]  ;;  %v560_v54 = vld [vmem:[%s895_s4] ss:$0 sm:$0xff]  ;;  %p651_p11 = scmp.ne.s32.totalorder %s844_s12, %s650_s18  ;;  %s717_s25 = smov [#allocation2]  }
  0x19   : > { %578 = vmatpush3.bf16.msra.mxu0 %v641_v2  ;;  %v277_v6 = vld [vmem:[%s264_s17 + $0x2] sm:$0xff]  ;;  %v276_v7 = vpack.c.bf16 %v275_v5, %v274_v4  ;;  %v278_v8 = vld [vmem:[%s264_s17 + $0xa] sm:$0xff]  ;;  %s654_s19 = sshll.u32 %s717_s25, 4  ;;  %s655_s19 = int_to_ptr.vmem [resolvable:$false] %s654_s19 }
  0x1a   : > { %579 = vmatprep.subr.bf16.mxu0 %v712_v1  ;;  %v279_v9 = vpack.c.bf16 %v278_v8, %v277_v6  ;;  %v271_v13 = vld [vmem:[%s264_s17] sm:$0xff]  ;;  %v272_v14 = vld [vmem:[%s264_s17 + $0x8] sm:$0xff]  ;;  %s851_s17 = scalar_lea.sflag [#allocation3], %s257_s26  ;;  %p652_p12 = pnand %p651_p11, %p793_p5 }
  0x1b   : > { %281 = vrot.lane.b32.xlu0 %v276_v7, %s714_s20  ;;  %v273_v16 = vpack.c.bf16 %v272_v14, %v271_v13  ;;  %s656_s11 = scalar_lea.vmem %s655_s19, 512  ;;  %p657_p0 = scmp.lt.s32.totalorder %s844_s12, %s655_s19 }
  0x1c   : > { %p653_p13 = pneg %p652_p12  ;;  %p658_p1 = scmp.lt.s32.totalorder %s656_s11, %s650_s18 }
  0x1d   : > { %580 = vmatpush3.bf16.msra.mxu0 %v642_v3 }
  0x1e   : > { %581 = vmatprep.subr.bf16.mxu0 %v712_v1  ;;  %p659_p2 = por %p658_p1, %p657_p0 }
  0x1f   : > { %284 = vrot.lane.b32.xlu0 %v279_v9, %s715_s29 }
  0x20   : > { %p660_p3 = pnand %p659_p2, %p653_p13 }
  0x21   : > { %582 = vmatpush3.bf16.msra.mxu0 %v643_v10 }
  0x22   : > { %583 = vmatprep.subr.bf16.mxu0 %v712_v1 }
  0x25   : > { %584 = vmatpush3.bf16.msra.mxu0 %v644_v11 }
  0x26   : > { %585 = vmatprep.subr.bf16.mxu0 %v712_v1 }
  0x29   : > { %586 = vmatpush3.bf16.msra.mxu0 %v645_v12 }
  0x8d   : > { %v282_v15 = vpop.permute.xlu0 %281 }
  0x8e   : > { %v289_v17 = vsel %vm286_vm1, %v273_v16, %v282_v15 }
  0x91   : > { %v285_v18 = vpop.permute.xlu0 %284 }
  0x92   : > { %v292_v19 = vsel %vm290_vm2, %v289_v17, %v285_v18 }
  0x93   : > { %588 = vmatmul.mubr.msk.bf16.vlgmr.msra.gmra.mxu0 %vm348_vm3, %v292_v19 }
 0x153   : > { %v385_v22 = vpop.f32.mrf.mxu0 }
 0x154   : > { %v386_v23 = vadd.f32 %v551_v21, %v385_v22 }
 0x155   : > { %v589_v24 = vpop.f32.mrf.mxu0 }
 0x156   : > { %v392_v25 = vmax.f32 %v386_v23, 0.0 }
 0x157   : > { %v388_v26 = vpop.f32.mrf.mxu0 }
 0x158   : > { %v389_v27 = vadd.f32 %v551_v21, %v388_v26  ;;  %394 = vadd.xlane.f32.xlu1 %v392_v25 }
 0x159   : > { %v590_v28 = vpop.f32.mrf.mxu0 }
 0x15a   : > { %v393_v29 = vmax.f32 %v389_v27, 0.0 }
 0x15c   : > { %396 = vadd.xlane.f32.xlu1 %v393_v29 }
 0x16d   : > { %443 = vperm.xlu1 %638, %v439_v30  }
 0x1e1   : > { %v395_v32 = vpop.xlane.xlu1 %394 }
 0x1e2   : > { %v398_v34 = vmul.f32 0.03125, %v395_v32 }
 0x1e4   : > { %v400_v35 = vsub.f32 %v392_v25, %v398_v34 }
 0x1e5   : > { %v397_v36 = vpop.xlane.xlu1 %396 }
 0x1e6   : > { %v399_v37 = vmul.f32 0.03125, %v397_v36  ;;  %v402_v38 = vmul.f32 %v400_v35, %v400_v35 }
 0x1e8   : > { %v401_v39 = vsub.f32 %v393_v29, %v399_v37  ;;  %v407_v40 = vsel %vm406_vm4, %v402_v38, 0.0 }
 0x1e9   : > { %409 = vadd.xlane.f32.xlu0 %v407_v40  ;;  %v444_v44 = vpop.permute.xlu1 %443 }
 0x1ea   : > { %v403_v41 = vmul.f32 %v401_v39, %v401_v39 }
 0x1ec   : > { %v408_v42 = vsel %vm406_vm4, %v403_v41, 0.0 }
 0x1ed   : > { %411 = vadd.xlane.f32.xlu1 %v408_v42 }
 0x1fe   : > { %448 = vperm.xlu1 %638, %v440_v43  }
 0x272   : > { %v410_v45 = vpop.xlane.xlu0 %409 }
 0x273   : > { %v413_v46 = vmul.f32 0.03125, %v410_v45 }
 0x275   : > { %v415_v47 = vadd.f32 1e-05, %v413_v46 }
 0x276   : > { %v412_v48 = vpop.xlane.xlu1 %411 }
 0x277   : > { %646 = vrsqrt.f32 %v415_v47  ;;  %v414_v49 = vmul.f32 0.03125, %v412_v48 }
 0x279   : > { %v416_v50 = vadd.f32 1e-05, %v414_v49 }
 0x27a   : > { %v449_v62 = vpop.permute.xlu1 %448 }
 0x27b   : > { %648 = vrsqrt.f32 %v416_v50 }
 0x284   : > { %v647_v51 = vpop.eup %646 }
 0x285   : > { %v419_v53 = vmul.f32 %v647_v51, %v400_v35 }
 0x287   : > { %v428_v55 = vmul.f32 %v559_v52, %v419_v53 }
 0x288   : > { %v649_v56 = vpop.eup %648 }
 0x289   : > { %v420_v57 = vmul.f32 %v649_v56, %v401_v39  ;;  %v437_v58 = vadd.f32 %v560_v54, %v428_v55 }
 0x28b   : > { %v429_v59 = vmul.f32 %v559_v52, %v420_v57  ;;  %v451_v60 = vmul.f32 %v444_v44, %v437_v58 }
 0x28d   : > { %v438_v61 = vadd.f32 %v560_v54, %v429_v59  ;;  %453 = vst [vmem:[%s259_s10] sm:$0xff] %v451_v60 }
 0x28f   : > { %v452_v63 = vmul.f32 %v449_v62, %v438_v61 }
 0x291   : > { %454 = vst [vmem:[%s259_s10 + $0x8] sm:$0xff] %v452_v63 }
 0x292   : > { %663 = shalt.err (!%p660_p3)
}
 0x293   : > { %s664_s20 = scalar_lea.hbm %s849_s16, 256  ;;  %s668_s29 = scalar_lea.hbm %s897_s6, 512 }
 0x294   : > { %p665_p4 = scmp.ne.s32.totalorder %s849_s16, %s664_s20  ;;  %p669_p9 = scmp.lt.s32.totalorder %s849_s16, %s897_s6 }
 0x295   : > { %p670_p10 = scmp.lt.s32.totalorder %s668_s29, %s664_s20 }
 0x296   : > { %p666_p7 = pnand %p665_p4, %p793_p5 }
 0x297   : > { %p671_p11 = por %p670_p10, %p669_p9 }
 0x298   : > { %p667_p8 = pneg %p666_p7 }
 0x29a   : > { %p672_p12 = pnand %p671_p11, %p667_p8 }
 0x29c   : > { %675 = shalt.err (!%p672_p12)
}
 0x29d   : > { %s718_s13 = smov 128   ;;  %s719_s14 = smov 8  }
 0x29e   : > { %592 = dma.vmem_to_hbm [thread:$0]  (%p793_p5), %s844_s12, 256, %s849_s16, %s851_s17, %s718_s13, %s718_s13, %s719_s14  }
 0x29f PF: > { %p598_p13 = scmp.ge.s32.totalorder %s710_s24, 2  ;;  %s484_s15 = sand.u32 1, %s698_s21  }
 0x2a0   : > { %s485_s18 = scalar_lea.sflag [#allocation3], %s484_s15 }
 0x2a1   : > { %p595_p0 = pnand %p598_p13, %p797_p6 }
 0x2a3   : > { %p596_p1 = pneg %p595_p0 }
 0x2a5   : > { %693 = dma.done.wait (%p596_p1), %s485_s18, 256  }
 0x2a6   : > { %695 = vsyncadd (%p596_p1), %s485_s18, 4294967040  ;;  %p16_p2 = scmp.ge.s32.totalorder %s780_s27, 4   ;;  %s900_s21 = smov %s702_s22 }
 0x2a7   : > { %s901_s22 = smov %s706_s23  ;;  %s902_s23 = smov %s791_s30 }
 0x2a8   : > { %s903_s24 = smov %s780_s27  ;;  %18 = sbr.rel (!%p16_p2) target bundleno = 3 (0x3), region = 82 }
 0x2ad   :  { %490 = vsyncpa [#allocation3], 1 }
 0x2ae   :  { %492 = vsyncpa [#allocation3 + $0x1], 1 }

</bundles_post_ra>
